<compile_context>
chip_gen: v5e
topology: v5e:2x2
jax: 0.10.0
libtpu: 0.0.40
codegen_flags: <defaults>
</compile_context>

<pallas_src>
import functools
import math

import jax
import jax.numpy as jnp
from jax.experimental import pallas as pl
from jax.experimental.pallas import tpu as pltpu


def make_pe_table(d_model: int, max_len: int) -> jnp.ndarray:
    """Deterministic sinusoidal positional-encoding table, matches the torch code."""
    # Same limitation as the torch reference (pe[:, 1::2] shape mismatch for odd D).
    assert d_model % 2 == 0, "d_model must be even"
    position = jnp.arange(max_len, dtype=jnp.float32)[:, None]              # (L, 1)
    div_term = jnp.exp(
        jnp.arange(0, d_model, 2, dtype=jnp.float32)
        * (-math.log(10000.0) / d_model)
    )                                                                        # (D/2,)
    pe = jnp.zeros((max_len, d_model), dtype=jnp.float32)
    pe = pe.at[:, 0::2].set(jnp.sin(position * div_term))
    pe = pe.at[:, 1::2].set(jnp.cos(position * div_term))
    return pe


# ----------------------------------------------------------------------------
# Hardware queries (safe defaults if the query is unavailable).
# ----------------------------------------------------------------------------

def _vmem_capacity_bytes() -> int:
    try:
        return int(pltpu.get_tpu_info().vmem_capacity_bytes)
    except Exception:
        return 64 << 20  # conservative: v7x per-TC VMEM


def _native_bf16_vpu() -> bool:
    """bf16 VPU exists on v6e and newer; v5e and older need the f32 path."""
    try:
        kind = jax.devices()[0].device_kind.lower()
    except Exception:
        return False
    return not any(t in kind for t in ("v2", "v3", "v4", "v5"))


# ----------------------------------------------------------------------------
# Kernel bodies
# ----------------------------------------------------------------------------

def _posenc2d_kernel(x_ref, pe_ref, o_ref, *, bcast_rows, compute_f32):
    # x_ref: (tile_b, tile_sd) activations block; pe_ref: (1, tile_sd) pe chunk.
    if bcast_rows is not None:
        # Sublane broadcast in the load path (keeps VALU/XLU slots idle).
        pe = pe_ref[pl.ds(0, bcast_rows, stride=0), :]
    else:
        pe = pe_ref[...]
    x = x_ref[...]
    if compute_f32:
        x = x.astype(jnp.float32)
        pe = pe.astype(jnp.float32)
    o_ref[...] = (x + pe).astype(o_ref.dtype)


def _posenc3d_kernel(x_ref, pe_ref, o_ref, *, compute_f32):
    # x_ref: (1, tile_s, D); pe_ref: (tile_s, D).
    x = x_ref[...]
    pe = pe_ref[...][None, :, :]
    if compute_f32:
        x = x.astype(jnp.float32)
        pe = pe.astype(jnp.float32)
    o_ref[...] = (x + pe).astype(o_ref.dtype)


# ----------------------------------------------------------------------------
# Tiling
# ----------------------------------------------------------------------------

def _tile_sizes_2d(n_rows: int, n_lanes: int, itemsize: int, budget_bytes: int):
    """Lane-dense tiles with the byte budget enforced; (8,128)-legal or full extent."""
    # Lane (last-dim) tile.
    if n_lanes % 128 == 0:
        cap_l = max(128, (budget_bytes // (8 * itemsize)) // 128 * 128)
        tile_l = min(n_lanes, cap_l)
        while n_lanes % tile_l:
            tile_l -= 128
        tile_l = max(tile_l, 128)
    else:
        tile_l = n_lanes  # full extent; caller guarantees the budget still holds.

    # Row (sublane) tile.
    row_cap = max(8, budget_bytes // max(1, tile_l * itemsize))
    if n_rows % 8 == 0 and n_rows > row_cap:
        tile_r = max(8, (row_cap // 8) * 8)
        while n_rows % tile_r:
            tile_r -= 8
        tile_r = max(tile_r, 8)
    else:
        tile_r = n_rows  # full extent

    # Megacore: ensure >= 2 grid steps on a "parallel" axis whenever legally
    # possible (v7x has 2 TensorCores; a single-block grid uses only one).
    if (n_rows // tile_r) * (n_lanes // tile_l) == 1:
        if tile_l % 256 == 0:
            tile_l //= 2
        elif tile_r % 16 == 0:
            tile_r //= 2
    return tile_r, tile_l


# ----------------------------------------------------------------------------
# Wrapper
# ----------------------------------------------------------------------------

def positional_encoding(x: jnp.ndarray, pe: jnp.ndarray) -> jnp.ndarray:
    """x: (B, S, D), pe: (max_len, D) f32. Returns x + pe[:S] (eval-mode dropout)."""
    B, S, D = x.shape
    assert pe.shape[0] >= S and pe.shape[1] == D
    SD = S * D
    itemsize = x.dtype.itemsize

    vmem_cap = _vmem_capacity_bytes()
    budget = min(16 << 20, max(2 << 20, vmem_cap // 16))        # per-block x bytes
    vmem_limit = min(48 << 20, max(16 << 20, vmem_cap // 3))    # scoped VMEM limit

    # Native bf16 add on v6e/v7x; f32 compute otherwise (f32 inputs, v5e, ...).
    compute_f32 = not (x.dtype == jnp.bfloat16 and _native_bf16_vpu())
    pe_dtype = jnp.float32 if compute_f32 else x.dtype

    bytes_accessed = 2 * B * SD * itemsize + SD * jnp.dtype(pe_dtype).itemsize
    cost = pl.CostEstimate(flops=B * SD, transcendentals=0,
                           bytes_accessed=bytes_accessed)
    cparams = pltpu.CompilerParams(
        dimension_semantics=("parallel", "parallel"),
        vmem_limit_bytes=vmem_limit,
    )

    min_rows = 8 if B % 8 == 0 else B
    lane_dense_ok = (SD % 128 == 0) or (min_rows * SD * itemsize <= budget)

    if lane_dense_ok:
        # --- Lane-dense 2-D path: x as (B, S*D), pe[:S] as (1, S*D). ---------
        tile_b, tile_sd = _tile_sizes_2d(B, SD, itemsize, budget)
        grid = (SD // tile_sd, B // tile_b)     # (lane tiles OUTER, row tiles INNER)

        x2 = x.reshape(B, SD)
        pe2 = pe[:S].reshape(1, SD).astype(pe_dtype)

        bcast_rows = tile_b if tile_b % 8 == 0 else None
        kernel = functools.partial(_posenc2d_kernel,
                                   bcast_rows=bcast_rows, compute_f32=compute_f32)

        out2 = pl.pallas_call(
            kernel,
            out_shape=jax.ShapeDtypeStruct((B, SD), x.dtype),
            grid_spec=pltpu.PrefetchScalarGridSpec(
                num_scalar_prefetch=0,
                grid=grid,
                in_specs=[
                    pl.BlockSpec((tile_b, tile_sd), lambda j, i: (i, j)),
                    # pe chunk for lane-tile j; j is the OUTER axis, so this
                    # block index is invariant over the inner (row) axis and
                    # each pe chunk is DMA'd exactly once.
                    pl.BlockSpec((1, tile_sd), lambda j, i: (0, j)),
                ],
                out_specs=pl.BlockSpec((tile_b, tile_sd), lambda j, i: (i, j)),
            ),
            input_output_aliases={0: 0},        # donate x into the output buffer
            compiler_params=cparams,
            cost_estimate=cost,
        )(x2, pe2)
        return out2.reshape(B, S, D)

    # --- 3-D fallback: S*D not 128-aligned and too large for one lane slab. --
    if S % 8 == 0:
        cap_s = max(8, (budget // max(1, D * itemsize)) // 8 * 8)
        tile_s = min(S, cap_s)
        while S % tile_s:
            tile_s -= 8
        tile_s = max(tile_s, 8)
    else:
        tile_s = S  # full extent
        # TODO(synk): further split along D for huge, non-8-aligned S.

    grid = (S // tile_s, B)                     # (seq tiles OUTER, batch INNER)
    pe3 = pe[:S].astype(pe_dtype)
    kernel = functools.partial(_posenc3d_kernel, compute_f32=compute_f32)

    return pl.pallas_call(
        kernel,
        out_shape=jax.ShapeDtypeStruct((B, S, D), x.dtype),
        grid_spec=pltpu.PrefetchScalarGridSpec(
            num_scalar_prefetch=0,
            grid=grid,
            in_specs=[
                pl.BlockSpec((1, tile_s, D), lambda s, b: (b, s, 0)),
                # pe tile invariant over the inner batch axis -> DMA'd once per
                # sequence tile.
                pl.BlockSpec((tile_s, D), lambda s, b: (s, 0)),
            ],
            out_specs=pl.BlockSpec((1, tile_s, D), lambda s, b: (b, s, 0)),
        ),
        input_output_aliases={0: 0},
        compiler_params=cparams,
        cost_estimate=cost,
    )(x, pe3)


if __name__ == "__main__":
    # Small shapes consistent with the module: d_model=32, max_len=10, seq=8, batch=2.
    B, S, D, MAX_LEN = 2, 8, 32, 10

    key = jax.random.PRNGKey(0)
    x = jax.random.normal(key, (B, S, D), dtype=jnp.float32)

    pe = make_pe_table(d_model=D, max_len=MAX_LEN)

    out = jax.block_until_ready(positional_encoding(x, pe))

    # Reference check (pure JAX) — eval-mode forward: x + pe[:S]
    ref = x + pe[:S][None, :, :]
    assert out.shape == (B, S, D)
    assert jnp.allclose(out, ref, atol=1e-6, rtol=1e-6), "mismatch vs reference"

    print("KERNEL_OK")
</pallas_src>

<mosaic_0001>
module attributes {stable_mosaic.version = 11 : i64} {
  func.func @_posenc2d_kernel(%arg0: i32, %arg1: i32, %arg2: memref<2x128xf32, #tpu.memory_space<vmem>>, %arg3: memref<1x128xf32, #tpu.memory_space<vmem>>, %arg4: memref<2x128xf32, #tpu.memory_space<vmem>>) attributes {dimension_semantics = [#tpu.dimension_semantics<parallel>, #tpu.dimension_semantics<parallel>], iteration_bounds = array<i64: 2, 1>, scalar_prefetch = 0 : i64, scratch_operands = 0 : i64, tpu.core_type = #tpu.core_type<tc>, window_params = [{transform_indices = @transform_0, window_bounds = array<i64: 2, 128>}, {transform_indices = @transform_1, window_bounds = array<i64: 1, 128>}, {transform_indices = @transform_2, window_bounds = array<i64: 2, 128>}]} {
    %c0 = arith.constant 0 : index
    %c0_0 = arith.constant 0 : index
    %0 = vector.load %arg3[%c0, %c0_0] : memref<1x128xf32, #tpu.memory_space<vmem>>, vector<1x128xf32>
    %c0_1 = arith.constant 0 : index
    %c0_2 = arith.constant 0 : index
    %1 = vector.load %arg2[%c0_1, %c0_2] : memref<2x128xf32, #tpu.memory_space<vmem>>, vector<2x128xf32>
    %2 = vector.broadcast %0 : vector<1x128xf32> to vector<2x128xf32>
    %3 = arith.addf %1, %2 : vector<2x128xf32>
    %c0_3 = arith.constant 0 : index
    %c0_4 = arith.constant 0 : index
    %4 = vector.load %arg4[%c0_3, %c0_4] : memref<2x128xf32, #tpu.memory_space<vmem>>, vector<2x128xf32>
    tpu.vector_store %arg4[%c0_3, %c0_4], %3 {strides = array<i32>} : memref<2x128xf32, #tpu.memory_space<vmem>>, vector<2x128xf32>,
    return
  }
  func.func @transform_0(%arg0: i32, %arg1: i32) -> (i32, i32) {
    %c0_i32 = arith.constant 0 : i32
    return %arg1, %arg0 : i32, i32
  }
  func.func @transform_1(%arg0: i32, %arg1: i32) -> (i32, i32) {
    %c0_i32 = arith.constant 0 : i32
    %c0_i32_0 = arith.constant 0 : i32
    return %c0_i32, %arg0 : i32, i32
  }
  func.func @transform_2(%arg0: i32, %arg1: i32) -> (i32, i32) {
    %c0_i32 = arith.constant 0 : i32
    return %arg1, %arg0 : i32, i32
  }
}

</mosaic_0001>

<bundles_post_ra>
// kernel: tpu_custom_call.1
= control target key start
LH: loop header
LB: loop body
LE: loop exit
PB: predicated region body
PF: predicated region fallthrough
CT: control target
= control target key end

     0   :  { %7 = vsyncpa [#allocation3], 0  ;;  %s639_s0 = inlined_call_operand.hbm [shape: f32[2,256], index: 0, kind: input, shape index: {}, may-alias: {0,2}]   ;;  %s640_s1 = inlined_call_operand.vmem [shape: f32[1,256], index: 1, kind: input, shape index: {}]   ;;  %s641_s2 = inlined_call_operand.hbm [shape: f32[2,256], index: 2, kind: output, shape index: {}, may-alias: {0,2}]  }
   0x1   :  { %9 = vsyncpa [#allocation3 + $0x1], 0 }
   0x2   :  { %10 = vsyncpa [#allocation4], 0 }
   0x3   :  { %12 = vsyncpa [#allocation4 + $0x1], 0  ;;  %s514_s9 = smov 0   ;;  %s516_s10 = smov 0  }
   0x4   :  { %s518_s11 = smov 0   ;;  %s520_s12 = smov 0  }
   0x5   :  { %s522_s13 = smov 0   ;;  %s524_s14 = smov 0  }
   0x6 LB: > { %s309_s15 = sadd.s32 4294967295, %s497_s14   ;;  %s310_s16 = sadd.s32 4294967294, %s497_s14   ;;  %s497_s14 = sphi %s524_s14, %s18_s14   ;;  %s493_s13 = sphi %s522_s13, %s650_s13   ;;  %s489_s12 = sphi %s520_s12, %s649_s12   ;;  %s485_s11 = sphi %s518_s11, %s648_s11   ;;  %s481_s10 = sphi %s516_s10, %s647_s10   ;;  %s477_s9 = sphi %s514_s9, %s646_s9  }
   0x7   : > { %s30_s17 = sadd.s32 1, %s493_s13  ;;  %s39_s18 = sadd.s32 1, %s485_s11 }
   0x8   : > { %p32_p0 = scmp.ge.s32.totalorder %s30_s17, 2  ;;  %p46_p1 = scmp.ne.s32.totalorder %s485_s11, %s481_s10 }
   0x9   : > { %p47_p2 = scmp.eq.s32.totalorder %s497_s14, 0  ;;  %p52_p3 = scmp.ne.s32.totalorder %s481_s10, %s477_s9 }
   0xa   : > { %s652_s17 = smov (%p32_p0, %s30_s17), 0  ;;  %p53_p5 = scmp.eq.s32.totalorder %s309_s15, 0 }
   0xb   : > { %p555_p4 = por %p47_p2, %p46_p1  ;;  %s35_s20 = ssub.s32 %s493_s13, %s652_s17 }
   0xc   : > { %p104_p6 = scmp.eq.s32.totalorder %s309_s15, 1  ;;  %p37_p7 = scmp.eq.s32.totalorder %s35_s20, 0 }
   0xd   : > { %p561_p8 = por %p53_p5, %p52_p3  ;;  %p110_p10 = scmp.eq.s32.totalorder %s310_s16, 1 }
   0xe   : > { %p565_p9 = por %p104_p6, %p46_p1  ;;  %p312_p12 = scmp.ge.s32.totalorder %s497_s14, 2 }
   0xf   : > { %s570_s23 = scalar_select %p37_p7, %s485_s11, %s39_s18  }
  0x10   : > { %p572_p11 = por %p110_p10, %p52_p3  ;;  %p334_p13 = scmp.lt.s32.totalorder %s497_s14, 2 }
  0x11   : > { %s130_s25 = sand.u32 1, %s485_s11   ;;  %s314_s27 = sshll.u32 %s493_s13, 1 }
  0x12   : > { %s313_s26 = sshll.u32 %s130_s25, 1  ;;  %s140_s30 = scalar_lea.hbm %s639_s0, %s314_s27 }
  0x13   : > { %s134_s3 = scalar_lea.vmem [#allocation2], %s313_s26  ;;  %s142_s5 = sshll.u32 %s140_s30, 4  ;;  %s143_s5 = int_to_ptr.hbm [resolvable:$true] %s142_s5 }
  0x14   : > { %s144_s4 = sshll.u32 %s134_s3, 4  ;;  %p327_p0 = pnand %p334_p13, %p555_p4  ;;  %s145_s4 = int_to_ptr.vmem [resolvable:$true] %s144_s4 }
  0x15   : > { %p315_p1 = scmp.ge.s32.totalorder %s497_s14, 1  ;;  %p155_p2 = scmp.lt.s32.totalorder %s497_s14, 3 }
  0x16   : > { %s131_s6 = scalar_lea.sflag [#allocation3], %s130_s25 }
  0x17   : > { %329 = dma.hbm_to_vmem [thread:$0]  (!%p327_p0), %s143_s5, 32, %s145_s4, %s131_s6  }
  0x18   : > { %p156_p3 = pnand %p315_p1, %p155_p2 }
  0x19   : > { %s588_s7 = sand.u32 (!%p156_p3), 1, %s481_s10  }
  0x1a   : > { %159 = sbr.rel (%p156_p3) target bundleno = 49 (0x31), region = 28  ;;  %s316_s8 = sshll.u32 (!%p156_p3), %s588_s7, 1 }
  0x1b   : > { %s162_s15 = scalar_lea.sflag (!%p156_p3), [#allocation3], %s588_s7  ;;  %s165_s16 = scalar_lea.vmem (!%p156_p3), [#allocation2], %s316_s8 }
  0x1f   : > { %468 = dma.done.wait (%p561_p8), %s162_s15, 32  }
  0x20   : > { %470 = vsyncadd (%p561_p8), %s162_s15, 4294967264  ;;  %p190_p4 = scmp.lt.s32.totalorder %s489_s12, 1  ;;  %s319_s19 = sshll.u32 %s489_s12, 1  ;;  %v194_v0 = vld [vmem:[%s165_s16] sm:$0x3] }
  0x21   : > { %s213_s29 = scalar_lea.hbm %s641_s2, %s319_s19  ;;  %s189_s30 = scalar_lea.vmem [#allocation5], %s316_s8 }
  0x22   : > { %s191_s18 = scalar_select %p190_p4, %s489_s12, 1 }
  0x23   : > { %s215_s3 = sshll.u32 %s189_s30, 4  ;;  %s217_s21 = sshll.u32 %s213_s29, 4  ;;  %s216_s3 = int_to_ptr.vmem [resolvable:$true] %s215_s3  ;;  %s218_s21 = int_to_ptr.hbm [resolvable:$true] %s217_s21 }
  0x24   : > { %s192_s26 = scalar_lea.vmem %s640_s1, %s191_s18  ;;  %s201_s4 = scalar_lea.sflag [#allocation4], %s588_s7 }
  0x25   : > { %v384_v1 = vld [vmem:[%s192_s26] ss:$0 sm:$0xff]  ;;  %s429_s12 = sshra.s32 %s218_s21, 4  ;;  %s435_s8 = scalar_lea.hbm %s641_s2, 4  ;;  %s430_s12 = int_to_ptr.hbm [resolvable:$true] %s429_s12 }
  0x26   : > { %v198_v2 = vadd.f32 %v384_v1, %v194_v0  ;;  %s431_s5 = scalar_lea.hbm %s430_s12, 2  ;;  %p436_p8 = scmp.lt.s32.totalorder %s430_s12, %s641_s2 }
  0x27   : > { %p432_p5 = scmp.ne.s32.totalorder %s430_s12, %s431_s5  ;;  %p437_p10 = scmp.lt.s32.totalorder %s435_s8, %s431_s5 }
  0x28   : > { %199 = vst [vmem:[%s189_s30] sm:$0x3] %v198_v2 }
  0x29   : > { %p433_p6 = pnand %p432_p5, %p565_p9  ;;  %p438_p13 = por %p437_p10, %p436_p8 }
  0x2b   : > { %p434_p7 = pneg %p433_p6 }
  0x2d   : > { %p439_p0 = pnand %p438_p13, %p434_p7 }
  0x2f   : > { %442 = shalt.err (!%p439_p0)
}
  0x30   : > { %324 = dma.vmem_to_hbm [thread:$0]  (%p565_p9), %s216_s3, 32, %s218_s21, %s201_s4  }
  0x31 PF: > { %s229_s7 = sand.u32 1, %s477_s9   ;;  %p331_p1 = pnand %p312_p12, %p572_p11 }
  0x32   : > { %s230_s16 = scalar_lea.sflag [#allocation4], %s229_s7 }
  0x33   : > { %p332_p2 = pneg %p331_p1 }
  0x35   : > { %472 = dma.done.wait (%p332_p2), %s230_s16, 32  }
  0x36   : > { %474 = vsyncadd (%p332_p2), %s230_s16, 4294967264  ;;  %s18_s14 = sadd.s32 1, %s497_s14   ;;  %s646_s9 = smov %s481_s10 }
  0x37   : > { %p15_p3 = scmp.ge.s32.totalorder %s18_s14, 4   ;;  %s647_s10 = smov %s485_s11 }
  0x38   : > { %s648_s11 = smov %s570_s23  ;;  %s649_s12 = smov %s493_s13 }
  0x39   : > { %s650_s13 = smov %s652_s17  ;;  %17 = sbr.rel (!%p15_p3) target bundleno = 6 (0x6), region = 76 }
  0x3e   :  { %236 = vsyncpa [#allocation3], 1 }
  0x3f   :  { %238 = vsyncpa [#allocation3 + $0x1], 1 }
  0x40   :  { %239 = vsyncpa [#allocation4], 1 }
  0x41   :  { %241 = vsyncpa [#allocation4 + $0x1], 1 }

</bundles_post_ra>
